<compile_context>
chip_gen: v7x
topology: tpu7x:2x2x1
jax: 0.10.0
libtpu: 0.0.40
codegen_flags: <defaults>
</compile_context>

<pallas_src>
import functools

import jax
import jax.numpy as jnp
from jax import lax
from jax.experimental import pallas as pl
from jax.experimental.pallas import tpu as pltpu


def _round_up(v, m):
    return ((v + m - 1) // m) * m


def _epilogue(y_f32, b_ref, xres_ref, o_ref, negative_slope, residual):
    y = y_f32 + b_ref[...].astype(jnp.float32)
    # LeakyReLU(negative_slope) in f32 (cheap epilogue on all chips).
    y = jnp.where(y > 0, y, negative_slope * y)
    if residual:
        y = y + xres_ref[...].astype(jnp.float32)
    o_ref[...] = y.astype(o_ref.dtype)


def _ffn_kernel_single_k(x_ref, w_ref, b_ref, *rest, negative_slope, residual):
    # Single K step: no accumulator scratch; dot -> epilogue -> store.
    # x_ref: (TM, TK), w_ref: (TN, TK) PyTorch layout, b_ref: (1, TN)
    if residual:
        xres_ref, o_ref = rest
    else:
        (o_ref,) = rest
        xres_ref = None
    y = lax.dot_general(
        x_ref[...], w_ref[...],
        dimension_numbers=(((1,), (1,)), ((), ())),   # (TM,TK) . (TN,TK)^T
        preferred_element_type=jnp.float32)
    _epilogue(y, b_ref, xres_ref, o_ref, negative_slope, residual)


def _ffn_kernel_multi_k(x_ref, w_ref, b_ref, *rest, negative_slope, residual):
    # K is the last ("arbitrary") grid axis; acc_ref is resident across it.
    if residual:
        xres_ref, o_ref, acc_ref = rest
    else:
        o_ref, acc_ref = rest
        xres_ref = None

    k = pl.program_id(2)
    partial = lax.dot_general(
        x_ref[...], w_ref[...],
        dimension_numbers=(((1,), (1,)), ((), ())),
        preferred_element_type=jnp.float32)

    @pl.when(k == 0)
    def _():
        acc_ref[...] = partial          # overwrite: no zero-fill + RMW pass

    @pl.when(k > 0)
    def _():
        acc_ref[...] += partial

    @pl.when(k == pl.num_programs(2) - 1)
    def _():
        _epilogue(acc_ref[...], b_ref, xres_ref, o_ref, negative_slope,
                  residual)


def feed_forward(x, weight, bias, *, indices=None, residual=False,
                 negative_slope=0.1, block_m=512, block_n=512, block_k=1024,
                 compute_dtype=jnp.bfloat16, vmem_limit_bytes=None):
    """Pallas equivalent of FeedForward.forward(x, indices).

    x:      (..., n_inp)
    weight: (n_out, n_inp)   (PyTorch nn.Linear layout, used as-is)
    bias:   (n_out,)
    compute_dtype: MXU operand dtype (bf16 recommended; pass jnp.float32 for
                   exact parity with the f32 PyTorch module).  Accumulation and
                   the bias / activation / residual epilogue are always f32.
    """
    if indices is not None:
        # TODO(synk): move this row gather into the kernel (scalar-prefetch +
        # DMA gather from an HBM-resident weight) to avoid materializing a
        # second copy of the weight in HBM before the kernel runs.
        weight = jnp.take(weight, indices, axis=0)
        bias = jnp.take(bias, indices, axis=0)

    lead_shape = x.shape[:-1]
    K = x.shape[-1]
    x2d = x.reshape(-1, K)
    M = x2d.shape[0]
    N, K2 = weight.shape
    assert K == K2
    if residual:
        assert N == K, "residual requires n_out == n_inp"

    out_dtype = x.dtype
    if compute_dtype is None:
        compute_dtype = x.dtype
    compute_dtype = jnp.dtype(compute_dtype)

    # Cast ONCE in the wrapper; the kernel streams compute_dtype tiles directly
    # (half the DMA bytes for bf16, no per-K-step VPU casts in the kernel).
    xc = x2d.astype(compute_dtype)
    wc = weight.astype(compute_dtype)

    # Sublane packing of the compute dtype: 8 (32-bit), 16 (bf16), 32 (8-bit).
    sub = max(8, 32 // compute_dtype.itemsize)
    bm = min(block_m, _round_up(M, sub))
    bn = min(block_n, _round_up(N, 128))
    bk = min(block_k, _round_up(K, 128))

    Mp, Np, Kp = _round_up(M, bm), _round_up(N, bn), _round_up(K, bk)

    # Residual reuses the SAME padded x array (N == K), so pad x wide enough
    # for both the (bm, bk) matmul tiles and the (bm, bn) residual tiles.
    x_cols = max(Kp, Np) if residual else Kp
    xp = xc if (Mp == M and x_cols == K) else jnp.pad(
        xc, ((0, Mp - M), (0, x_cols - K)))
    wp = wc if (Np == N and Kp == K) else jnp.pad(
        wc, ((0, Np - N), (0, Kp - K)))
    bp = bias if Np == N else jnp.pad(bias, ((0, Np - N),))
    b2 = bp.reshape(1, Np)

    gm, gn, gk = Mp // bm, Np // bn, Kp // bk
    single_k = (gk == 1)

    if single_k:
        grid = (gm, gn)
        in_specs = [
            pl.BlockSpec((bm, bk), lambda i, j: (i, 0)),   # x tile
            pl.BlockSpec((bn, bk), lambda i, j: (j, 0)),   # W tile (N, K)
            pl.BlockSpec((1, bn), lambda i, j: (0, j)),    # bias row tile
        ]
        inputs = [xp, wp, b2]
        if residual:
            in_specs.append(pl.BlockSpec((bm, bn), lambda i, j: (i, j)))
            inputs.append(xp)                              # shared padded x
        out_spec = pl.BlockSpec((bm, bn), lambda i, j: (i, j))
        scratch = []
        kernel = functools.partial(_ffn_kernel_single_k,
                                   negative_slope=negative_slope,
                                   residual=residual)
        dim_sem = ("parallel", "parallel")
    else:
        grid = (gm, gn, gk)
        in_specs = [
            pl.BlockSpec((bm, bk), lambda i, j, k: (i, k)),   # x tile
            pl.BlockSpec((bn, bk), lambda i, j, k: (j, k)),   # W tile (N, K)
            pl.BlockSpec((1, bn), lambda i, j, k: (0, j)),    # bias row tile
        ]
        inputs = [xp, wp, b2]
        if residual:
            in_specs.append(pl.BlockSpec((bm, bn), lambda i, j, k: (i, j)))
            inputs.append(xp)                                 # shared padded x
        out_spec = pl.BlockSpec((bm, bn), lambda i, j, k: (i, j))
        scratch = [pltpu.VMEM((bm, bn), jnp.float32)]
        kernel = functools.partial(_ffn_kernel_multi_k,
                                   negative_slope=negative_slope,
                                   residual=residual)
        dim_sem = ("parallel", "parallel", "arbitrary")

    # Advisory cost estimate: x re-read per N tile, W re-read per M tile.
    cs = compute_dtype.itemsize
    bytes_accessed = (Mp * Kp * cs * gn
                      + Np * Kp * cs * gm
                      + Np * b2.dtype.itemsize * gm
                      + Mp * Np * jnp.dtype(out_dtype).itemsize)
    if residual:
        bytes_accessed += Mp * Np * cs

    out = pl.pallas_call(
        kernel,
        out_shape=jax.ShapeDtypeStruct((Mp, Np), out_dtype),
        grid_spec=pltpu.PrefetchScalarGridSpec(
            num_scalar_prefetch=0,
            grid=grid,
            in_specs=in_specs,
            out_specs=out_spec,
            scratch_shapes=scratch),
        compiler_params=pltpu.CompilerParams(
            dimension_semantics=dim_sem,
            vmem_limit_bytes=vmem_limit_bytes),
        cost_estimate=pl.CostEstimate(
            flops=2 * Mp * Np * Kp,
            transcendentals=0,
            bytes_accessed=bytes_accessed),
    )(*inputs)

    if Mp != M or Np != N:
        out = out[:M, :N]
    return out.reshape(*lead_shape, N)


def feed_forward_ref(x, weight, bias, *, indices=None, residual=False,
                     negative_slope=0.1):
    """Pure-JAX reference mirroring the PyTorch forward."""
    if indices is not None:
        weight = weight[indices]
        bias = bias[indices]
    y = x @ weight.T + bias
    y = jnp.where(y > 0, y, negative_slope * y)
    if residual:
        y = y + x
    return y


if __name__ == "__main__":
    key = jax.random.PRNGKey(0)
    (k_x, k_w, k_b, k_idx, k_x2, k_w2, k_b2,
     k_x3, k_w3, k_b3) = jax.random.split(key, 10)

    # Small shapes consistent with the module: a FeedForward(32, 32).
    M, n_inp, n_out = 16, 32, 32
    x = jax.random.normal(k_x, (M, n_inp), dtype=jnp.float32)

    # uniform(-1/sqrt(n_inp), 1/sqrt(n_inp)) like nn.Linear's default init
    bound = float(1.0 / (n_inp ** 0.5))
    weight = jax.random.uniform(k_w, (n_out, n_inp), jnp.float32, -bound, bound)
    bias = jax.random.uniform(k_b, (n_out,), jnp.float32, -bound, bound)

    # --- path 1: linear + LeakyReLU + residual, f32 MXU operands (exact) ---
    y = jax.block_until_ready(
        feed_forward(x, weight, bias, residual=True,
                     compute_dtype=jnp.float32))
    y_ref = feed_forward_ref(x, weight, bias, residual=True)
    assert jnp.allclose(y, y_ref, atol=1e-5, rtol=1e-5)

    # --- path 2: same, default bf16 MXU operands (f32 epilogue) ---
    y_bf = jax.block_until_ready(feed_forward(x, weight, bias, residual=True))
    assert jnp.allclose(y_bf, y_ref, atol=2e-2, rtol=2e-2)

    # --- path 3: indices gather of weight/bias rows, residual=False ---
    indices = jax.random.permutation(k_idx, n_out)
    y2 = jax.block_until_ready(
        feed_forward(x, weight, bias, indices=indices, residual=False,
                     compute_dtype=jnp.float32))
    y2_ref = feed_forward_ref(x, weight, bias, indices=indices, residual=False)
    assert jnp.allclose(y2, y2_ref, atol=1e-5, rtol=1e-5)

    # --- path 4: ragged (non tile-aligned) shapes exercise the padding path ---
    M3, n_inp3, n_out3 = 37, 50, 70
    x3 = jax.random.normal(k_x2, (M3, n_inp3), dtype=jnp.float32)
    b3 = float(1.0 / (n_inp3 ** 0.5))
    w3 = jax.random.uniform(k_w2, (n_out3, n_inp3), jnp.float32, -b3, b3)
    bias3 = jax.random.uniform(k_b2, (n_out3,), jnp.float32, -b3, b3)
    y3 = jax.block_until_ready(
        feed_forward(x3, w3, bias3, residual=False,
                     compute_dtype=jnp.float32))
    y3_ref = feed_forward_ref(x3, w3, bias3, residual=False)
    assert jnp.allclose(y3, y3_ref, atol=1e-5, rtol=1e-5)

    # --- path 5: multi-K-step accumulator path (block_k < K), with residual ---
    M4, D4 = 32, 256
    x4 = jax.random.normal(k_x3, (M4, D4), dtype=jnp.float32)
    b4 = float(1.0 / (D4 ** 0.5))
    w4 = jax.random.uniform(k_w3, (D4, D4), jnp.float32, -b4, b4)
    bias4 = jax.random.uniform(k_b3, (D4,), jnp.float32, -b4, b4)
    y4 = jax.block_until_ready(
        feed_forward(x4, w4, bias4, residual=True,
                     block_m=32, block_n=128, block_k=128,
                     compute_dtype=jnp.float32))
    y4_ref = feed_forward_ref(x4, w4, bias4, residual=True)
    assert jnp.allclose(y4, y4_ref, atol=1e-5, rtol=1e-5)

    print("KERNEL_OK")
</pallas_src>

<mosaic_0001>
module attributes {stable_mosaic.version = 11 : i64} {
  func.func @_ffn_kernel_single_k(%arg0: i32, %arg1: i32, %arg2: memref<16x128xf32, #tpu.memory_space<vmem>>, %arg3: memref<128x128xf32, #tpu.memory_space<vmem>>, %arg4: memref<1x128xf32, #tpu.memory_space<vmem>>, %arg5: memref<16x128xf32, #tpu.memory_space<vmem>>, %arg6: memref<16x128xf32, #tpu.memory_space<vmem>>) attributes {dimension_semantics = [#tpu.dimension_semantics<parallel>, #tpu.dimension_semantics<parallel>], iteration_bounds = array<i64: 1, 1>, scalar_prefetch = 0 : i64, scratch_operands = 0 : i64, tpu.core_type = #tpu.core_type<tc>, window_params = [{transform_indices = @transform_0, window_bounds = array<i64: 16, 128>}, {transform_indices = @transform_1, window_bounds = array<i64: 128, 128>}, {transform_indices = @transform_2, window_bounds = array<i64: 1, 128>}, {transform_indices = @transform_3, window_bounds = array<i64: 16, 128>}, {transform_indices = @transform_4, window_bounds = array<i64: 16, 128>}]} {
    %c0 = arith.constant 0 : index
    %c0_0 = arith.constant 0 : index
    %0 = vector.load %arg2[%c0, %c0_0] : memref<16x128xf32, #tpu.memory_space<vmem>>, vector<16x128xf32>
    %c0_1 = arith.constant 0 : index
    %c0_2 = arith.constant 0 : index
    %1 = vector.load %arg3[%c0_1, %c0_2] : memref<128x128xf32, #tpu.memory_space<vmem>>, vector<128x128xf32>
    %cst = arith.constant dense<0.000000e+00> : vector<16x128xf32>
    %2 = tpu.matmul %0, %1, %cst {dimension_numbers = #tpu.dot_dimension_numbers<[1], [1], [0], [0], [0, 0, 1, 0], [], []>} : vector<16x128xf32>, vector<128x128xf32>, vector<16x128xf32> -> vector<16x128xf32>
    %c0_3 = arith.constant 0 : index
    %c0_4 = arith.constant 0 : index
    %3 = vector.load %arg4[%c0_3, %c0_4] : memref<1x128xf32, #tpu.memory_space<vmem>>, vector<1x128xf32>
    %4 = vector.broadcast %3 : vector<1x128xf32> to vector<16x128xf32>
    %5 = arith.addf %2, %4 : vector<16x128xf32>
    %cst_5 = arith.constant 0.000000e+00 : f32
    %6 = vector.broadcast %cst_5 : f32 to vector<16x128xf32>
    %7 = arith.cmpf ogt, %5, %6 : vector<16x128xf32>
    %cst_6 = arith.constant 1.000000e-01 : f32
    %8 = vector.broadcast %cst_6 : f32 to vector<16x128xf32>
    %9 = arith.mulf %8, %5 : vector<16x128xf32>
    %10 = arith.select %7, %5, %9 : vector<16x128xi1>, vector<16x128xf32>
    %c0_7 = arith.constant 0 : index
    %c0_8 = arith.constant 0 : index
    %11 = vector.load %arg5[%c0_7, %c0_8] : memref<16x128xf32, #tpu.memory_space<vmem>>, vector<16x128xf32>
    %12 = arith.addf %10, %11 : vector<16x128xf32>
    %c0_9 = arith.constant 0 : index
    %c0_10 = arith.constant 0 : index
    %13 = vector.load %arg6[%c0_9, %c0_10] : memref<16x128xf32, #tpu.memory_space<vmem>>, vector<16x128xf32>
    tpu.vector_store %arg6[%c0_9, %c0_10], %12 {strides = array<i32>} : memref<16x128xf32, #tpu.memory_space<vmem>>, vector<16x128xf32>,
    return
  }
  func.func @transform_0(%arg0: i32, %arg1: i32) -> (i32, i32) {
    %c0_i32 = arith.constant 0 : i32
    %c0_i32_0 = arith.constant 0 : i32
    return %arg0, %c0_i32 : i32, i32
  }
  func.func @transform_1(%arg0: i32, %arg1: i32) -> (i32, i32) {
    %c0_i32 = arith.constant 0 : i32
    %c0_i32_0 = arith.constant 0 : i32
    return %arg1, %c0_i32 : i32, i32
  }
  func.func @transform_2(%arg0: i32, %arg1: i32) -> (i32, i32) {
    %c0_i32 = arith.constant 0 : i32
    %c0_i32_0 = arith.constant 0 : i32
    return %c0_i32, %arg1 : i32, i32
  }
  func.func @transform_3(%arg0: i32, %arg1: i32) -> (i32, i32) {
    %c0_i32 = arith.constant 0 : i32
    return %arg0, %arg1 : i32, i32
  }
  func.func @transform_4(%arg0: i32, %arg1: i32) -> (i32, i32) {
    %c0_i32 = arith.constant 0 : i32
    return %arg0, %arg1 : i32, i32
  }
}

</mosaic_0001>

<bundles_post_ra>
// kernel: tpu_custom_call.1
= control target key start
LH: loop header
LB: loop body
LE: loop exit
PB: predicated region body
PF: predicated region fallthrough
CT: control target
= control target key end

     0   :  { %9 = vsyncpa [#allocation3], 0  ;;  %s476_s0 = inlined_call_operand.hbm [shape: f32[16,128], index: 0, kind: input, shape index: {}]   ;;  %s477_s1 = inlined_call_operand.hbm [shape: f32[128,128], index: 1, kind: input, shape index: {}]   ;;  %s478_s2 = inlined_call_operand.vmem [shape: f32[1,128], index: 2, kind: input, shape index: {}]   ;;  %s479_s3 = inlined_call_operand.hbm [shape: f32[16,128], index: 3, kind: input, shape index: {}]   ;;  %s480_s4 = inlined_call_operand.hbm [shape: f32[16,128], index: 4, kind: output, shape index: {}]  }
   0x1   :  { %10 = vsyncpa [#allocation6], 0 }
   0x2   :  { %11 = vsyncpa [#allocation4], 0  ;;  %s375_s15 = smov [#allocation5]   ;;  %s376_s17 = smov [#allocation2]  }
   0x3   :  { %s29_s16 = sshll.u32 %s375_s15, 4  ;;  %s17_s18 = sshll.u32 %s376_s17, 4  ;;  %s30_s16 = int_to_ptr.vmem [resolvable:$true] %s29_s16  ;;  %s406_s18 = int_to_ptr.vmem [resolvable:$true] %s17_s18 }
   0x4   :  { %s281_s21 = scalar_lea.hbm %s477_s1, 2048 }
   0x5   :  { %p282_p0 = scmp.ne.s32.totalorder %s477_s1, %s281_s21  ;;  %p285_p1 = scmp.lt.u32.totalorder %s281_s21, %s477_s1 }
   0x7   :  { %p287_p2 = pnand %p285_p1, %p282_p0 }
   0x9   :  { %290 = shalt.err (!%p287_p2)
}
   0xa   :  { %s291_s26 = scalar_lea.vmem %s30_s16, 2048  ;;  %p296_p4 = scmp.lt.s32.totalorder %s30_s16, %s30_s16 }
   0xb   :  { %p292_p3 = scmp.ne.s32.totalorder %s30_s16, %s291_s26  ;;  %p297_p5 = scmp.lt.s32.totalorder %s291_s26, %s291_s26 }
   0xd   :  { %p298_p6 = por %p297_p5, %p296_p4 }
   0xf   :  { %p299_p7 = pnand %p298_p6, %p292_p3 }
  0x11   :  { %302 = shalt.err (!%p299_p7)
}
  0x12   :  { %s377_s27 = smov 128   ;;  %s378_s28 = smov 8  }
  0x13   :  { %35 = dma.hbm_to_vmem [thread:$0]  %s477_s1, 2048, %s30_s16, [#allocation6], %s377_s27, %s377_s27, %s378_s28  }
  0x14   :  { %s303_s7 = scalar_lea.hbm %s476_s0, 256 }
  0x15   :  { %p304_p8 = scmp.ne.s32.totalorder %s476_s0, %s303_s7  ;;  %p307_p9 = scmp.lt.u32.totalorder %s303_s7, %s476_s0 }
  0x17   :  { %p309_p10 = pnand %p307_p9, %p304_p8 }
  0x19   :  { %312 = shalt.err (!%p309_p10)
}
  0x1a   :  { %s313_s12 = scalar_lea.vmem %s406_s18, 256  ;;  %p318_p12 = scmp.lt.s32.totalorder %s406_s18, %s406_s18 }
  0x1b   :  { %p314_p11 = scmp.ne.s32.totalorder %s406_s18, %s313_s12  ;;  %p319_p13 = scmp.lt.s32.totalorder %s313_s12, %s313_s12 }
  0x1d   :  { %p320_p0 = por %p319_p13, %p318_p12 }
  0x1f   :  { %p321_p1 = pnand %p320_p0, %p314_p11 }
  0x21   :  { %324 = shalt.err (!%p321_p1)
}
  0x22   :  { %23 = dma.hbm_to_vmem [thread:$0]  %s476_s0, 256, %s406_s18, [#allocation3], %s377_s27, %s377_s27, %s378_s28  }
  0x23   :  { %s379_s14 = smov [#allocation7]   ;;  %s325_s19 = scalar_lea.hbm %s479_s3, 256 }
  0x24   :  { %s43_s15 = sshll.u32 %s379_s14, 4  ;;  %p326_p2 = scmp.ne.s32.totalorder %s479_s3, %s325_s19  ;;  %s44_s15 = int_to_ptr.vmem [resolvable:$true] %s43_s15 }
  0x25   :  { %p329_p3 = scmp.lt.u32.totalorder %s325_s19, %s479_s3 }
  0x27   :  { %p331_p4 = pnand %p329_p3, %p326_p2 }
  0x29   :  { %334 = shalt.err (!%p331_p4)
}
  0x2a   :  { %s335_s24 = scalar_lea.vmem %s44_s15, 256  ;;  %p340_p6 = scmp.lt.s32.totalorder %s44_s15, %s44_s15 }
  0x2b   :  { %p336_p5 = scmp.ne.s32.totalorder %s44_s15, %s335_s24  ;;  %p341_p7 = scmp.lt.s32.totalorder %s335_s24, %s335_s24 }
  0x2d   :  { %p342_p8 = por %p341_p7, %p340_p6 }
  0x2f   :  { %p343_p9 = pnand %p342_p8, %p336_p5 }
  0x31   :  { %346 = shalt.err (!%p343_p9)
}
  0x32   :  { %49 = dma.hbm_to_vmem [thread:$0]  %s479_s3, 256, %s44_s15, [#allocation6], %s377_s27, %s377_s27, %s378_s28  }
  0x33   :  { %369 = dma.done.wait [#allocation3], 256  }
  0x34   :  { %370 = vsyncadd [#allocation3], 4294967040 }
  0x35   :  { %371 = dma.done.wait [#allocation6], 2304  }
  0x36   :  { %372 = vsyncadd [#allocation6], 4294964992  ;;  %v61_v0 = vld [vmem:[#allocation5] sm:$0xff]  ;;  %v62_v1 = vld [vmem:[#allocation5 + $0x8] sm:$0xff]  ;;  %s380_s26 = smov [#allocation8]  }
  0x37   :  { %v63_v2 = vld [vmem:[#allocation5 + $0x10] sm:$0xff]  ;;  %v243_v3 = vpack.c.bf16 %v62_v1, %v61_v0  ;;  %v64_v4 = vld [vmem:[#allocation5 + $0x18] sm:$0xff]  ;;  %v65_v7 = vld [vmem:[#allocation5 + $0x20] sm:$0xff]  ;;  %s176_s29 = sshll.u32 %s380_s26, 4  ;;  %s177_s29 = int_to_ptr.vmem [resolvable:$true] %s176_s29 }
  0x38   :  { %v247_v5 = vpack.c.bf16 %v64_v4, %v63_v2  ;;  %v59_v6 = vld [vmem:[#allocation2] sm:$0xff]  ;;  %v66_v8 = vld [vmem:[#allocation5 + $0x28] sm:$0xff]  ;;  %v68_v11 = vld [vmem:[#allocation5 + $0x38] sm:$0xff]  ;;  %p352_p11 = scmp.lt.s32.totalorder %s177_s29, %s177_s29 }
  0x39   :  { %244 = vmatprep.subr.bf16.mxu0 %v243_v3  ;;  %240 = vmatprep.mubr.f32.mxu0 %v59_v6  ;;  %v251_v9 = vpack.c.bf16 %v66_v8, %v65_v7  ;;  %v67_v10 = vld [vmem:[#allocation5 + $0x30] sm:$0xff]  ;;  %v69_v13 = vld [vmem:[#allocation5 + $0x40] sm:$0xff]  ;;  %v70_v14 = vld [vmem:[#allocation5 + $0x48] sm:$0xff] }
  0x3a   :  { %246 = vmatpush3.bf16.xpose.msra.mxu0 %v243_v3  ;;  %v255_v12 = vpack.c.bf16 %v68_v11, %v67_v10  ;;  %v259_v15 = vpack.c.bf16 %v70_v14, %v69_v13  ;;  %v71_v16 = vld [vmem:[#allocation5 + $0x50] sm:$0xff]  ;;  %v72_v17 = vld [vmem:[#allocation5 + $0x58] sm:$0xff]  ;;  %v73_v19 = vld [vmem:[#allocation5 + $0x60] sm:$0xff] }
  0x3b   :  { %248 = vmatprep.subr.bf16.mxu0 %v247_v5  ;;  %v263_v18 = vpack.c.bf16 %v72_v17, %v71_v16  ;;  %v74_v20 = vld [vmem:[#allocation5 + $0x68] sm:$0xff]  ;;  %v75_v22 = vld [vmem:[#allocation5 + $0x70] sm:$0xff]  ;;  %v76_v23 = vld [vmem:[#allocation5 + $0x78] sm:$0xff] }
  0x3c   :  { %v267_v21 = vpack.c.bf16 %v74_v20, %v73_v19  ;;  %v271_v24 = vpack.c.bf16 %v76_v23, %v75_v22  ;;  %v60_v25 = vld [vmem:[#allocation2 + $0x8] sm:$0xff]  ;;  %v189_v26 = vld [vmem:[%s478_s2] ss:$0 sm:$0xff]  ;;  %v166_v32 = vld [vmem:[#allocation7 + $0x8] sm:$0xff]  ;;  %s347_s2 = scalar_lea.vmem %s177_s29, 256 }
  0x3d   :  { %v165_v34 = vld [vmem:[#allocation7] sm:$0xff]  ;;  %p348_p10 = scmp.ne.s32.totalorder %s177_s29, %s347_s2  ;;  %p353_p12 = scmp.lt.s32.totalorder %s347_s2, %s347_s2 }
  0x3f   :  { %p354_p13 = por %p353_p12, %p352_p11 }
  0x41   :  { %p355_p0 = pnand %p354_p13, %p348_p10 }
  0x42   :  { %250 = vmatpush3.bf16.xpose.msra.mxu0 %v247_v5 }
  0x43   :  { %252 = vmatprep.subr.bf16.mxu0 %v251_v9 }
  0x4a   :  { %254 = vmatpush3.bf16.xpose.msra.mxu0 %v251_v9 }
  0x4b   :  { %256 = vmatprep.subr.bf16.mxu0 %v255_v12 }
  0x52   :  { %258 = vmatpush3.bf16.xpose.msra.mxu0 %v255_v12 }
  0x53   :  { %260 = vmatprep.subr.bf16.mxu0 %v259_v15 }
  0x5a   :  { %262 = vmatpush3.bf16.xpose.msra.mxu0 %v259_v15 }
  0x5b   :  { %264 = vmatprep.subr.bf16.mxu0 %v263_v18 }
  0x62   :  { %266 = vmatpush3.bf16.xpose.msra.mxu0 %v263_v18 }
  0x63   :  { %268 = vmatprep.subr.bf16.mxu0 %v267_v21 }
  0x6a   :  { %270 = vmatpush3.bf16.xpose.msra.mxu0 %v267_v21 }
  0x6b   :  { %272 = vmatprep.subr.bf16.mxu0 %v271_v24 }
  0x72   :  { %274 = vmatpush3.bf16.xpose.msra.mxu0 %v271_v24 }
  0x79   :  { %241 = vmatmul.mubr.f32.vlgmr.msra.gmra.mrb[0].mxu0 %v60_v25 }
 0x14c   :  { %v242_v27 = vpop.f32.mrb[0].mxu0 }
 0x14d   :  { %v156_v28 = vadd.f32 %v242_v27, %v189_v26  ;;  %v150_v29 = vpop.f32.mrb[1].mxu0 }
 0x14e   :  { %v151_v30 = vadd.f32 %v189_v26, %v150_v29 }
 0x14f   :  { %vm160_vm0 = vcmp.gt.f32.partialorder %v156_v28, 0.0  ;;  %v162_v31 = vmul.f32 0.1, %v156_v28 }
 0x150   :  { %vm159_vm1 = vcmp.gt.f32.partialorder %v151_v30, 0.0  ;;  %v161_v33 = vmul.f32 0.1, %v151_v30 }
 0x151   :  { %v164_v35 = vsel %vm160_vm0, %v156_v28, %v162_v31 }
 0x152   :  { %v163_v36 = vsel %vm159_vm1, %v151_v30, %v161_v33  ;;  %v168_v37 = vadd.f32 %v166_v32, %v164_v35 }
 0x153   :  { %v167_v38 = vadd.f32 %v165_v34, %v163_v36 }
 0x154   :  { %170 = vst [vmem:[#allocation8 + $0x8] sm:$0xff] %v168_v37 }
 0x155   :  { %169 = vst [vmem:[#allocation8] sm:$0xff] %v167_v38 }
 0x156   :  { %358 = shalt.err (!%p355_p0)
}
 0x157   :  { %s359_s6 = scalar_lea.hbm %s480_s4, 256 }
 0x158   :  { %p360_p1 = scmp.ne.s32.totalorder %s480_s4, %s359_s6  ;;  %p363_p2 = scmp.lt.u32.totalorder %s359_s6, %s480_s4 }
 0x15a   :  { %p365_p3 = pnand %p363_p2, %p360_p1 }
 0x15c   :  { %368 = shalt.err (!%p365_p3)
}
 0x15d   :  { %182 = dma.vmem_to_hbm [thread:$0]  %s177_s29, 256, %s480_s4, [#allocation4], %s377_s27, %s377_s27, %s378_s28  }
 0x15e   :  { %373 = dma.done.wait [#allocation4], 256  }
 0x15f   :  { %374 = vsyncadd [#allocation4], 4294967040 }
 0x160   :  { %186 = vsyncpa [#allocation3], 1 }
 0x161   :  { %187 = vsyncpa [#allocation6], 1 }
 0x162   :  { %188 = vsyncpa [#allocation4], 1 }

</bundles_post_ra>
